<compile_context>
chip_gen: v6e
topology: v6e:2x2x1
jax: 0.10.0
libtpu: 0.0.40
codegen_flags: <defaults>
</compile_context>

<pallas_src>
import jax
import jax.numpy as jnp
from jax.experimental import pallas as pl
from jax.experimental.pallas import tpu as pltpu

_LANES = 128
_SUBLANES = 8


def _tpu_config():
    """Per-generation (tile_rows, num_parallel_chunks, vmem_limit_bytes)."""
    try:
        kind = jax.devices()[0].device_kind.lower()
    except Exception:
        kind = ""
    if "v7" in kind or "7x" in kind:
        # 2 TensorCores/chip, ~3.2 TB/s HBM: bigger tiles amortize the
        # ~0.35 us/step grid overhead.  2 inputs x 2 buffers x 4 MiB = 16 MiB
        # of input buffers; set the scoped-VMEM limit explicitly (physical is
        # 64 MiB per TC).
        return 8192, 2, 40 * 1024 * 1024
    if "v6" in kind:
        # Single TC, ~1.4 TB/s HBM, 128 MiB physical VMEM.
        return 8192, 1, 40 * 1024 * 1024
    # v5e (and unknown chips): 4096-row tiles (2 MiB/block) keep the buffer
    # footprint (~8 MiB) under the 16 MiB default scoped-VMEM limit.
    return 4096, 1, None


def mse_loss(y_pt, y_gt):
    """Pallas TPU implementation of nn.MSELoss() (mean reduction)."""
    assert y_pt.shape == y_gt.shape, "MSELoss requires matching shapes"
    n = int(y_pt.size)
    assert n > 0

    out_dtype = jnp.result_type(y_pt.dtype, y_gt.dtype)

    a = jnp.ravel(y_pt)
    b = jnp.ravel(y_gt)

    # Flat, lane-dense (rows8, 128) view; rows rounded up to a sublane
    # multiple (8) so the per-vreg accumulation reshape is exact.  Padded
    # elements are zero in BOTH inputs, so (a-b)^2 == 0 there and no lane/tail
    # mask is ever needed for them.
    rows = -(-n // _LANES)
    rows8 = -(-rows // _SUBLANES) * _SUBLANES
    pad = rows8 * _LANES - n
    if pad:
        a = jnp.pad(a, (0, pad))
        b = jnp.pad(b, (0, pad))
    a2 = a.reshape(rows8, _LANES)
    b2 = b.reshape(rows8, _LANES)

    cfg_tile_rows, cfg_num_par, vmem_limit = _tpu_config()

    tile_rows = min(cfg_tile_rows, rows8)        # multiple of 8 by construction
    nb = -(-rows8 // tile_rows)                  # number of row-blocks
    num_par = cfg_num_par if nb >= cfg_num_par else 1
    steps = -(-nb // num_par)                    # inner ("arbitrary") steps/chunk

    # Masking is needed only if some grid step covers rows past rows8: either
    # the last real block is partial or ghost blocks exist (num_par sharding).
    needs_mask = (num_par * steps * tile_rows) != rows8

    def kernel(a_ref, b_ref, o_ref):
        p = pl.program_id(0)
        k = pl.program_id(1)
        nk = pl.num_programs(1)

        @pl.when(k == 0)
        def _():
            o_ref[...] = jnp.zeros_like(o_ref)

        def accumulate(mask_rows):
            # Hot path: cast -> subtract -> square -> per-vreg accumulate.
            d = a_ref[...].astype(jnp.float32) - b_ref[...].astype(jnp.float32)
            d2 = d * d
            if mask_rows:
                # Only the last real block / ghost blocks: zero rows past the
                # end of the (rows8, 128) slab (Pallas block-padding garbage
                # or clamped duplicate data from ghost blocks).
                lb = p * nk + k
                row = (jax.lax.broadcasted_iota(
                           jnp.int32, (tile_rows, _LANES), 0)
                       + lb * tile_rows)
                d2 = jnp.where(row < rows8, d2, 0.0)
            # vreg-aligned reshape; the axis-0 sum is pure VPU vreg adds.
            o_ref[...] += d2.reshape(
                tile_rows // _SUBLANES, _SUBLANES, _LANES).sum(axis=0)[None]

        if needs_mask:
            lb = p * nk + k
            @pl.when(lb < nb - 1)
            def _():
                accumulate(False)

            @pl.when(lb >= nb - 1)
            def _():
                accumulate(True)
        else:
            accumulate(False)

    if num_par == 1:
        def in_map(p, k):
            return (k, 0)
    else:
        def in_map(p, k):
            # Clamp so ghost blocks of the last chunk stay in bounds; their
            # contribution is masked to zero in the kernel.
            return (jnp.minimum(p * steps + k, nb - 1), 0)

    itemsize = max(jnp.dtype(y_pt.dtype).itemsize,
                   jnp.dtype(y_gt.dtype).itemsize)
    cost = pl.CostEstimate(
        flops=3 * rows8 * _LANES,
        transcendentals=0,
        bytes_accessed=2 * rows8 * _LANES * itemsize
        + num_par * _SUBLANES * _LANES * 4,
    )

    partial = pl.pallas_call(
        kernel,
        out_shape=jax.ShapeDtypeStruct((num_par, _SUBLANES, _LANES),
                                       jnp.float32),
        grid_spec=pltpu.PrefetchScalarGridSpec(
            num_scalar_prefetch=0,
            grid=(num_par, steps),
            in_specs=[
                pl.BlockSpec((tile_rows, _LANES), in_map),
                pl.BlockSpec((tile_rows, _LANES), in_map),
            ],
            out_specs=pl.BlockSpec((1, _SUBLANES, _LANES),
                                   lambda p, k: (p, 0, 0)),
        ),
        compiler_params=pltpu.CompilerParams(
            dimension_semantics=("parallel", "arbitrary"),
            vmem_limit_bytes=vmem_limit,
        ),
        cost_estimate=cost,
    )(a2, b2)

    # mean reduction: tiny final reduce + divide by the true element count.
    mean = jnp.sum(partial) / jnp.float32(n)
    return mean.astype(out_dtype)


if __name__ == "__main__":
    key = jax.random.PRNGKey(0)
    k1, k2 = jax.random.split(key)
    # Shapes consistent with a typical prediction/target pair (NCHW).
    x_shape = (2, 4, 16, 16)
    y_pt = jax.random.normal(k1, x_shape, dtype=jnp.float32)
    y_gt = jax.random.normal(k2, x_shape, dtype=jnp.float32)

    loss = mse_loss(y_pt, y_gt)
    jax.block_until_ready(loss)

    # Sanity check against plain JAX reference.
    ref = jnp.mean((y_pt - y_gt) ** 2)
    assert jnp.allclose(loss, ref, rtol=1e-5, atol=1e-6), (loss, ref)
    print("KERNEL_OK")
</pallas_src>

<mosaic_0001>
module attributes {stable_mosaic.version = 11 : i64} {
  func.func @kernel(%arg0: i32, %arg1: i32, %arg2: memref<16x128xf32, #tpu.memory_space<vmem>>, %arg3: memref<16x128xf32, #tpu.memory_space<vmem>>, %arg4: memref<1x8x128xf32, #tpu.memory_space<vmem>>) attributes {dimension_semantics = [#tpu.dimension_semantics<parallel>, #tpu.dimension_semantics<arbitrary>], iteration_bounds = array<i64: 1, 1>, scalar_prefetch = 0 : i64, scratch_operands = 0 : i64, tpu.core_type = #tpu.core_type<tc>, window_params = [{transform_indices = @transform_0, window_bounds = array<i64: 16, 128>}, {transform_indices = @transform_1, window_bounds = array<i64: 16, 128>}, {transform_indices = @transform_2, window_bounds = array<i64: 1, 8, 128>}]} {
    %c0_i32 = arith.constant 0 : i32
    %0 = arith.cmpi eq, %arg1, %c0_i32 : i32
    %1 = arith.extui %0 : i1 to i32
    %c0_i32_0 = arith.constant 0 : i32
    %2 = arith.cmpi ne, %1, %c0_i32_0 : i32
    scf.if %2 {
      %cst_10 = arith.constant 0.000000e+00 : f32
      %13 = vector.broadcast %cst_10 : f32 to vector<1x8x128xf32>
      %c0_11 = arith.constant 0 : index
      %c0_12 = arith.constant 0 : index
      %c0_13 = arith.constant 0 : index
      %14 = vector.load %arg4[%c0_11, %c0_12, %c0_13] : memref<1x8x128xf32, #tpu.memory_space<vmem>>, vector<1x8x128xf32>
      tpu.vector_store %arg4[%c0_11, %c0_12, %c0_13], %13 {strides = array<i32>} : memref<1x8x128xf32, #tpu.memory_space<vmem>>, vector<1x8x128xf32>,
    } else {
    }
    %c0 = arith.constant 0 : index
    %c0_1 = arith.constant 0 : index
    %3 = vector.load %arg2[%c0, %c0_1] : memref<16x128xf32, #tpu.memory_space<vmem>>, vector<16x128xf32>
    %c0_2 = arith.constant 0 : index
    %c0_3 = arith.constant 0 : index
    %4 = vector.load %arg3[%c0_2, %c0_3] : memref<16x128xf32, #tpu.memory_space<vmem>>, vector<16x128xf32>
    %5 = arith.subf %3, %4 : vector<16x128xf32>
    %6 = arith.mulf %5, %5 : vector<16x128xf32>
    %c0_4 = arith.constant 0 : index
    %c0_5 = arith.constant 0 : index
    %c0_6 = arith.constant 0 : index
    %7 = vector.load %arg4[%c0_4, %c0_5, %c0_6] : memref<1x8x128xf32, #tpu.memory_space<vmem>>, vector<1x8x128xf32>
    %8 = vector.shape_cast %6 : vector<16x128xf32> to vector<2x8x128xf32>
    %cst = arith.constant dense<0.000000e+00> : vector<8x128xf32>
    %9 = vector.multi_reduction <add>, %8, %cst [0] : vector<2x8x128xf32> to vector<8x128xf32>
    %10 = vector.shape_cast %9 : vector<8x128xf32> to vector<1x8x128xf32>
    %11 = arith.addf %7, %10 : vector<1x8x128xf32>
    %c0_7 = arith.constant 0 : index
    %c0_8 = arith.constant 0 : index
    %c0_9 = arith.constant 0 : index
    %12 = vector.load %arg4[%c0_7, %c0_8, %c0_9] : memref<1x8x128xf32, #tpu.memory_space<vmem>>, vector<1x8x128xf32>
    tpu.vector_store %arg4[%c0_7, %c0_8, %c0_9], %11 {strides = array<i32>} : memref<1x8x128xf32, #tpu.memory_space<vmem>>, vector<1x8x128xf32>,
    return
  }
  func.func @transform_0(%arg0: i32, %arg1: i32) -> (i32, i32) {
    %c0_i32 = arith.constant 0 : i32
    %c0_i32_0 = arith.constant 0 : i32
    return %arg1, %c0_i32 : i32, i32
  }
  func.func @transform_1(%arg0: i32, %arg1: i32) -> (i32, i32) {
    %c0_i32 = arith.constant 0 : i32
    %c0_i32_0 = arith.constant 0 : i32
    return %arg1, %c0_i32 : i32, i32
  }
  func.func @transform_2(%arg0: i32, %arg1: i32) -> (i32, i32, i32) {
    %c0_i32 = arith.constant 0 : i32
    %c0_i32_0 = arith.constant 0 : i32
    %c0_i32_1 = arith.constant 0 : i32
    return %arg0, %c0_i32, %c0_i32_0 : i32, i32, i32
  }
}

</mosaic_0001>

<bundles_post_ra>
// kernel: tpu_custom_call.1
= control target key start
LH: loop header
LB: loop body
LE: loop exit
PB: predicated region body
PF: predicated region fallthrough
CT: control target
= control target key end

     0   :  { %7 = vsyncpa [#allocation3], 0  ;;  %s174_s0 = inlined_call_operand.hbm [shape: f32[16,128], index: 0, kind: input, shape index: {}]   ;;  %s175_s1 = inlined_call_operand.hbm [shape: f32[16,128], index: 1, kind: input, shape index: {}]   ;;  %s176_s2 = inlined_call_operand.hbm [shape: f32[1,8,128], index: 2, kind: output, shape index: {}]  }
   0x1   :  { %8 = vsyncpa [#allocation6], 0 }
   0x2   :  { %9 = vsyncpa [#allocation4], 0  ;;  %s145_s9 = smov [#allocation2]  }
   0x3   :  { %s15_s10 = sshll.u32 %s145_s9, 4  ;;  %s16_s10 = int_to_ptr.vmem [resolvable:$true] %s15_s10 }
   0x4   :  { %s87_s11 = scalar_lea.vmem %s16_s10, 256  ;;  %p92_p1 = scmp.lt.s32.totalorder %s16_s10, %s16_s10 }
   0x5   :  { %p88_p0 = scmp.ne.s32.totalorder %s16_s10, %s87_s11  ;;  %p93_p2 = scmp.lt.s32.totalorder %s87_s11, %s87_s11 }
   0x7   :  { %p94_p3 = por %p93_p2, %p92_p1 }
   0x9   :  { %p95_p4 = pnand %p94_p3, %p88_p0 }
   0xb   :  { %98 = shalt.err (!%p95_p4)
}
   0xc   :  { %s146_s12 = smov 128   ;;  %s147_s13 = smov 8  }
   0xd   :  { %21 = dma.hbm_to_vmem [thread:$0]  %s174_s0, 256, %s16_s10, [#allocation3], %s146_s12, %s146_s12, %s147_s13  }
   0xe   :  { %s148_s16 = smov [#allocation5]  }
   0xf   :  { %s27_s17 = sshll.u32 %s148_s16, 4  ;;  %s28_s17 = int_to_ptr.vmem [resolvable:$true] %s27_s17 }
  0x10   :  { %s107_s18 = scalar_lea.vmem %s28_s17, 256  ;;  %p112_p6 = scmp.lt.s32.totalorder %s28_s17, %s28_s17 }
  0x11   :  { %p108_p5 = scmp.ne.s32.totalorder %s28_s17, %s107_s18  ;;  %p113_p7 = scmp.lt.s32.totalorder %s107_s18, %s107_s18 }
  0x13   :  { %p114_p8 = por %p113_p7, %p112_p6 }
  0x15   :  { %p115_p9 = pnand %p114_p8, %p108_p5 }
  0x17   :  { %118 = shalt.err (!%p115_p9)
}
  0x18   :  { %33 = dma.hbm_to_vmem [thread:$0]  %s175_s1, 256, %s28_s17, [#allocation6], %s146_s12, %s146_s12, %s147_s13  }
  0x19   :  { %139 = dma.done.wait [#allocation3], 256  }
  0x1a   :  { %140 = vsyncadd [#allocation3], 4294967040 }
  0x1b   :  { %141 = dma.done.wait [#allocation6], 256  }
  0x1c   :  { %142 = vsyncadd [#allocation6], 4294967040  ;;  %v45_v0 = vld [vmem:[#allocation2] sm:$0xff]  ;;  %v46_v1 = vld [vmem:[#allocation2 + $0x8] sm:$0xff]  ;;  %s149_s0 = smov [#allocation7]  }
  0x1d   :  { %v47_v2 = vld [vmem:[#allocation5] sm:$0xff]  ;;  %v48_v3 = vld [vmem:[#allocation5 + $0x8] sm:$0xff]  ;;  %s63_s21 = sshll.u32 %s149_s0, 4  ;;  %s64_s21 = int_to_ptr.vmem [resolvable:$true] %s63_s21 }
  0x1e   :  { %v49_v4 = vsub.f32 %v45_v0, %v47_v2  ;;  %v50_v5 = vsub.f32 %v46_v1, %v48_v3  ;;  %s119_s22 = scalar_lea.vmem %s64_s21, 128  ;;  %p124_p11 = scmp.lt.s32.totalorder %s64_s21, %s64_s21 }
  0x1f   :  { %p120_p10 = scmp.ne.s32.totalorder %s64_s21, %s119_s22  ;;  %p125_p12 = scmp.lt.s32.totalorder %s119_s22, %s119_s22 }
  0x20   :  { %v51_v6 = vmul.f32 %v49_v4, %v49_v4  ;;  %v52_v7 = vmul.f32 %v50_v5, %v50_v5 }
  0x21   :  { %p126_p13 = por %p125_p12, %p124_p11 }
  0x22   :  { %v54_v8 = vadd.f32 %v52_v7, %v51_v6 }
  0x23   :  { %p127_p0 = pnand %p126_p13, %p120_p10 }
  0x24   :  { %56 = vst [vmem:[#allocation7] sm:$0xff] %v54_v8 }
  0x25   :  { %130 = shalt.err (!%p127_p0)
}
  0x26   :  { %66 = dma.vmem_to_hbm [thread:$0]  %s64_s21, 128, %s176_s2, [#allocation4]  }
  0x27   :  { %143 = dma.done.wait [#allocation4], 128  }
  0x28   :  { %144 = vsyncadd [#allocation4], 4294967168 }
  0x29   :  { %70 = vsyncpa [#allocation3], 1 }
  0x2a   :  { %71 = vsyncpa [#allocation6], 1 }
  0x2b   :  { %72 = vsyncpa [#allocation4], 1 }

</bundles_post_ra>
